<compile_context>
chip_gen: v7x
topology: tpu7x:2x2x1
jax: 0.10.0
libtpu: 0.0.40
codegen_flags: <defaults>
</compile_context>

<pallas_src>
import math

import jax
import jax.numpy as jnp
from jax.experimental import pallas as pl
from jax.experimental.pallas import tpu as pltpu

_VMEM_LIMIT = 48 * 1024 * 1024    # explicit scoped-VMEM cap; still valid on v7x (64 MiB)
_TILE_BUDGET = 16 * 1024 * 1024   # budget for the double-buffered working set per call


def _round_up(x, m):
    return (x + m - 1) // m * m


def _pad_to(x, shape):
    pads = [(0, s - d) for d, s in zip(x.shape, shape)]
    if all(p == (0, 0) for p in pads):
        return x
    return jnp.pad(x, pads)


# ---------------------------------------------------------------------------
# Time-parallel input projection:  U = X @ W_ih + (b_ih + b_hh)
# One lane-dense row-tiled matmul over all B*T rows, outside the serial loop.
# ---------------------------------------------------------------------------
def _affine_kernel(x_ref, w_ref, b_ref, o_ref):
    o_ref[...] = (jnp.dot(x_ref[...], w_ref[...], preferred_element_type=jnp.float32)
                  + b_ref[...]).astype(o_ref.dtype)   # b is (1, N) -> row broadcast


def _affine(x, w, b, *, max_block_rows=512):
    """y = x @ w + b.  x: (M, K), w: (K, N), b: (N,).  f32, row-tiled, tail padded."""
    M, K = x.shape
    N = w.shape[1]
    # Row tile from the VMEM budget (x block + out block, double-buffered).
    bytes_per_row = 4 * (K + N) * 2
    bm = max(8, min(max_block_rows, (_TILE_BUDGET // bytes_per_row) // 8 * 8))
    bm = min(bm, _round_up(M, 8))
    Mp = _round_up(M, bm)
    xp = _pad_to(x.astype(jnp.float32), (Mp, K))
    out = pl.pallas_call(
        _affine_kernel,
        out_shape=jax.ShapeDtypeStruct((Mp, N), jnp.float32),
        grid=(Mp // bm,),
        in_specs=[
            pl.BlockSpec((bm, K), lambda i: (i, 0)),
            pl.BlockSpec((K, N), lambda i: (0, 0)),
            pl.BlockSpec((1, N), lambda i: (0, 0)),
        ],
        out_specs=pl.BlockSpec((bm, N), lambda i: (i, 0)),
        compiler_params=pltpu.CompilerParams(
            dimension_semantics=("parallel",),
            vmem_limit_bytes=_VMEM_LIMIT),
    )(xp, w.astype(jnp.float32), b.reshape(1, N).astype(jnp.float32))
    return out[:M] if Mp != M else out


# ---------------------------------------------------------------------------
# Serial recurrence + fused FC head.
#   h_t   = sigmoid(h_{t-1} @ W_hh + u_t)
#   out_t = sigmoid(h_t @ W_fc^T + b_fc)
# Grid = (batch blocks [parallel], time blocks [arbitrary]); hidden state carried
# in VMEM scratch; outputs written batch-major directly (no wrapper transpose).
# ---------------------------------------------------------------------------
def _make_recurrence_kernel(tt, bb, action_dim):
    def kernel(u_ref, h0_ref, w_hh_ref, w_fc_ref, b_fc_ref,
               h_out_ref, o_ref, h_scratch):
        # Re-init the carried state at the start of each batch block's time sweep.
        @pl.when(pl.program_id(1) == 0)
        def _():
            h_scratch[...] = h0_ref[...]

        # Grid-invariant operands: touch their VMEM blocks once per grid step,
        # not once per unrolled timestep.
        w_hh = w_hh_ref[...]
        w_fc = w_fc_ref[...]
        b_fc = jnp.broadcast_to(b_fc_ref[...], (bb, action_dim))

        h = h_scratch[...]
        # Static Python unroll: every Ref index below is a compile-time constant,
        # so batch-major stores are plain static slices.
        for i in range(tt):
            h = jax.nn.sigmoid(
                jnp.dot(h, w_hh, preferred_element_type=jnp.float32) + u_ref[:, i, :])
            h_out_ref[:, i, :] = h
            # Fused FC head: off the serial h-dependence chain -> near-free compute.
            o_ref[:, i, :] = jax.nn.sigmoid(
                jnp.dot(h, w_fc, preferred_element_type=jnp.float32) + b_fc)
        h_scratch[...] = h

    return kernel


def _pick_time_block(T, bb, hid_p, action_dim, *, max_tt=64):
    """Largest multiple-of-8 time block that fits the VMEM budget (<= max_tt)."""
    # Per-timestep bytes in the double-buffered working set: U in-block + rnn_out
    # out-block + out out-block (lane-padded to >= 128), all f32, double-buffered.
    per_t = 4 * bb * (hid_p + hid_p + max(action_dim, 128)) * 2
    tt_cap = max(8, min(max_tt, (_TILE_BUDGET // per_t) // 8 * 8))
    t8 = _round_up(T, 8)
    if t8 <= tt_cap:
        return t8, t8                       # one (padded) block covers all timesteps
    return tt_cap, _round_up(T, tt_cap)


def rnn_forward(inp, hn, params):
    """inp: (B, T, inp_dim), hn: (1, B, hid_dim). Returns (out, hn_last, rnn_out)."""
    w_hh, w_ih, b_hh, b_ih, w_fc, b_fc = params
    B, T, inp_dim = inp.shape
    hid_dim = w_hh.shape[0]
    action_dim = w_fc.shape[0]
    f32 = jnp.float32

    # Lane/sublane-dense padding (sliced back off at the end).  Zero-padding W_hh,
    # W_ih, biases and W_fc^T keeps padded hidden columns inert: they settle at
    # sigmoid(0) but only ever multiply zero weight rows.
    Bp = _round_up(B, 8)
    Hp = _round_up(hid_dim, 128)

    # Batch-block split: feeds v7x's second TensorCore for large batches; degrades to
    # a size-1 parallel axis (harmless) for small B on v5e/v6e.
    nb = 2 if (Bp >= 16 and Bp % 16 == 0) else 1
    bb = Bp // nb

    tt, Tp = _pick_time_block(T, bb, Hp, action_dim)

    inp_p = _pad_to(inp.astype(f32), (Bp, Tp, inp_dim))
    h0_p = _pad_to(hn[0].astype(f32), (Bp, Hp))
    w_ih_p = _pad_to(w_ih.astype(f32), (inp_dim, Hp))
    w_hh_p = _pad_to(w_hh.astype(f32), (Hp, Hp))
    bias_p = _pad_to((b_ih + b_hh).astype(f32), (Hp,))
    w_fcT_p = _pad_to(jnp.transpose(w_fc).astype(f32), (Hp, action_dim))
    b_fc_2d = b_fc.astype(f32).reshape(1, action_dim)

    # --- (1) Hoisted, time-parallel input projection (batch-major, no transposes). ---
    u = _affine(inp_p.reshape(Bp * Tp, inp_dim), w_ih_p, bias_p)
    u = u.reshape(Bp, Tp, Hp)

    # --- (2) Serial recurrence with fused FC head; outputs written batch-major. ---
    rnn_full, out_full = pl.pallas_call(
        _make_recurrence_kernel(tt, bb, action_dim),
        out_shape=(jax.ShapeDtypeStruct((Bp, Tp, Hp), f32),
                   jax.ShapeDtypeStruct((Bp, Tp, action_dim), f32)),
        grid=(nb, Tp // tt),
        in_specs=[
            pl.BlockSpec((bb, tt, Hp), lambda b, t: (b, t, 0)),          # U
            pl.BlockSpec((bb, Hp), lambda b, t: (b, 0)),                 # h0
            pl.BlockSpec((Hp, Hp), lambda b, t: (0, 0)),                 # W_hh (resident)
            pl.BlockSpec((Hp, action_dim), lambda b, t: (0, 0)),         # W_fc^T (resident)
            pl.BlockSpec((1, action_dim), lambda b, t: (0, 0)),          # b_fc (resident)
        ],
        out_specs=(
            pl.BlockSpec((bb, tt, Hp), lambda b, t: (b, t, 0)),          # rnn_out
            pl.BlockSpec((bb, tt, action_dim), lambda b, t: (b, t, 0)),  # out
        ),
        scratch_shapes=[pltpu.VMEM((bb, Hp), f32)],
        compiler_params=pltpu.CompilerParams(
            dimension_semantics=("parallel", "arbitrary"),
            vmem_limit_bytes=_VMEM_LIMIT),
    )(u, h0_p, w_hh_p, w_fcT_p, b_fc_2d)

    # --- (3) Slice padding back off (no-ops when shapes were already dense). ---
    rnn_out = rnn_full
    out = out_full
    if (Bp, Tp, Hp) != (B, T, hid_dim):
        rnn_out = rnn_full[:B, :T, :hid_dim]
    if (Bp, Tp) != (B, T):
        out = out_full[:B, :T, :]
    hn_last = rnn_out[:, -1, :][None]       # wrapper-side slice, not a kernel output
    return out, hn_last, rnn_out


# ---------------------------------------------------------------------------
# Parameter init matching the PyTorch module, and a pure-JAX reference.
# ---------------------------------------------------------------------------
def _init_params(key, inp_dim, hid_dim, action_dim):
    k1, k2, k3, k4, k5, k6 = jax.random.split(key, 6)
    lim_hh = math.sqrt(6.0 / (hid_dim + hid_dim))
    lim_ih = math.sqrt(6.0 / (inp_dim + hid_dim))
    w_hh = jax.random.uniform(k1, (hid_dim, hid_dim), jnp.float32, -lim_hh, lim_hh)
    w_ih = jax.random.uniform(k2, (inp_dim, hid_dim), jnp.float32, -lim_ih, lim_ih)
    b_hh = jax.random.uniform(k3, (hid_dim,), jnp.float32, 0.0, 1.0)
    b_ih = jax.random.uniform(k4, (hid_dim,), jnp.float32, 0.0, 1.0)
    lim_fc = 1.0 / math.sqrt(hid_dim)
    w_fc = jax.random.uniform(k5, (action_dim, hid_dim), jnp.float32, -lim_fc, lim_fc)
    b_fc = jax.random.uniform(k6, (action_dim,), jnp.float32, -lim_fc, lim_fc)
    return (w_hh, w_ih, b_hh, b_ih, w_fc, b_fc)


def _reference(inp, hn, params):
    w_hh, w_ih, b_hh, b_ih, w_fc, b_fc = params
    h = hn[0]
    hs = []
    for t in range(inp.shape[1]):
        h = jax.nn.sigmoid(h @ w_hh + inp[:, t, :] @ w_ih + b_hh + b_ih)
        hs.append(h)
    rnn_out = jnp.stack(hs, axis=1)
    hn_last = rnn_out[:, -1, :][None]
    out = jax.nn.sigmoid(rnn_out @ w_fc.T + b_fc)
    return out, hn_last, rnn_out


if __name__ == "__main__":
    B, T, inp_dim, hid_dim, action_dim = 2, 8, 4, 32, 4

    key = jax.random.PRNGKey(0)
    kp, kx, kh = jax.random.split(key, 3)
    params = _init_params(kp, inp_dim, hid_dim, action_dim)
    inp = jax.random.normal(kx, (B, T, inp_dim), jnp.float32)
    hn = jax.random.normal(kh, (1, B, hid_dim), jnp.float32)

    out, hn_last, rnn_out = rnn_forward(inp, hn, params)
    jax.block_until_ready((out, hn_last, rnn_out))

    ref_out, ref_hn, ref_rnn = _reference(inp, hn, params)
    assert jnp.allclose(out, ref_out, atol=1e-5), "out mismatch"
    assert jnp.allclose(hn_last, ref_hn, atol=1e-5), "hn_last mismatch"
    assert jnp.allclose(rnn_out, ref_rnn, atol=1e-5), "rnn_out mismatch"
    assert out.shape == (B, T, action_dim)
    assert hn_last.shape == (1, B, hid_dim)
    assert rnn_out.shape == (B, T, hid_dim)

    print("KERNEL_OK")
</pallas_src>

<mosaic_0001>
module attributes {stable_mosaic.version = 11 : i64} {
  func.func @_affine_kernel(%arg0: i32, %arg1: memref<64x4xf32, #tpu.memory_space<vmem>>, %arg2: memref<4x128xf32, #tpu.memory_space<vmem>>, %arg3: memref<1x128xf32, #tpu.memory_space<vmem>>, %arg4: memref<64x128xf32, #tpu.memory_space<vmem>>) attributes {dimension_semantics = [#tpu.dimension_semantics<parallel>], iteration_bounds = array<i64: 1>, scalar_prefetch = 0 : i64, scratch_operands = 0 : i64, tpu.core_type = #tpu.core_type<tc>, window_params = [{transform_indices = @transform_0, window_bounds = array<i64: 64, 4>}, {pipeline_mode = #tpu.pipeline_mode<synchronous>, transform_indices = @transform_1, window_bounds = array<i64: 4, 128>}, {pipeline_mode = #tpu.pipeline_mode<synchronous>, transform_indices = @transform_2, window_bounds = array<i64: 1, 128>}, {transform_indices = @transform_3, window_bounds = array<i64: 64, 128>}]} {
    %c0 = arith.constant 0 : index
    %c0_0 = arith.constant 0 : index
    %0 = vector.load %arg1[%c0, %c0_0] : memref<64x4xf32, #tpu.memory_space<vmem>>, vector<64x4xf32>
    %c0_1 = arith.constant 0 : index
    %c0_2 = arith.constant 0 : index
    %1 = vector.load %arg2[%c0_1, %c0_2] : memref<4x128xf32, #tpu.memory_space<vmem>>, vector<4x128xf32>
    %cst = arith.constant dense<0.000000e+00> : vector<64x128xf32>
    %2 = tpu.matmul %0, %1, %cst {dimension_numbers = #tpu.dot_dimension_numbers<[1], [0], [0], [1], [0, 0, 1, 1], [], []>} : vector<64x4xf32>, vector<4x128xf32>, vector<64x128xf32> -> vector<64x128xf32>
    %c0_3 = arith.constant 0 : index
    %c0_4 = arith.constant 0 : index
    %3 = vector.load %arg3[%c0_3, %c0_4] : memref<1x128xf32, #tpu.memory_space<vmem>>, vector<1x128xf32>
    %4 = vector.broadcast %3 : vector<1x128xf32> to vector<64x128xf32>
    %5 = arith.addf %2, %4 : vector<64x128xf32>
    %c0_5 = arith.constant 0 : index
    %c0_6 = arith.constant 0 : index
    %6 = vector.load %arg4[%c0_5, %c0_6] : memref<64x128xf32, #tpu.memory_space<vmem>>, vector<64x128xf32>
    tpu.vector_store %arg4[%c0_5, %c0_6], %5 {strides = array<i32>} : memref<64x128xf32, #tpu.memory_space<vmem>>, vector<64x128xf32>,
    return
  }
  func.func @transform_0(%arg0: i32) -> (i32, i32) {
    %c0_i32 = arith.constant 0 : i32
    %c0_i32_0 = arith.constant 0 : i32
    return %arg0, %c0_i32 : i32, i32
  }
  func.func @transform_1(%arg0: i32) -> (i32, i32) {
    %c0_i32 = arith.constant 0 : i32
    %c0_i32_0 = arith.constant 0 : i32
    %c0_i32_1 = arith.constant 0 : i32
    return %c0_i32, %c0_i32_0 : i32, i32
  }
  func.func @transform_2(%arg0: i32) -> (i32, i32) {
    %c0_i32 = arith.constant 0 : i32
    %c0_i32_0 = arith.constant 0 : i32
    %c0_i32_1 = arith.constant 0 : i32
    return %c0_i32, %c0_i32_0 : i32, i32
  }
  func.func @transform_3(%arg0: i32) -> (i32, i32) {
    %c0_i32 = arith.constant 0 : i32
    %c0_i32_0 = arith.constant 0 : i32
    return %arg0, %c0_i32 : i32, i32
  }
}

</mosaic_0001>

<bundles_post_ra>
// kernel: tpu_custom_call.1
= control target key start
LH: loop header
LB: loop body
LE: loop exit
PB: predicated region body
PF: predicated region fallthrough
CT: control target
= control target key end

     0   :  { %vm56_vm0 = vcmask 1043456   ;;  %vm31_vm1 = vcmask 31744   ;;  %s324_s0 = inlined_call_operand.vmem [shape: f32[64,4], index: 0, kind: input, shape index: {}]   ;;  %s325_s1 = inlined_call_operand.vmem [shape: f32[4,128], index: 1, kind: input, shape index: {}]   ;;  %s326_s2 = inlined_call_operand.vmem [shape: f32[1,128], index: 2, kind: input, shape index: {}]   ;;  %s327_s3 = inlined_call_operand.hbm [shape: f32[64,128], index: 3, kind: output, shape index: {}]  }
   0x1   :  { %v23_v0 = vld [vmem:[%s325_s1] sm:$0xf]  ;;  %v16_v3 = vld [vmem:[%s324_s0 + $0x8] sm:$0xff]  ;;  %v17_v5 = vld [vmem:[%s324_s0 + $0x10] sm:$0xff] }
   0x2   :  { %v15_v1 = vld [vmem:[%s324_s0] sm:$0xff]  ;;  %208 = vmatprep.subr.msk.mxu0 %vm56_vm0, %v23_v0  ;;  %222 = vmatprep.subr.msk.mxu1 %vm56_vm0, %v23_v0  ;;  %v20_v4 = vld [vmem:[%s324_s0 + $0x28] sm:$0xff]  ;;  %v21_v6 = vld [vmem:[%s324_s0 + $0x30] sm:$0xff] }
   0x3   :  { %v19_v2 = vld [vmem:[%s324_s0 + $0x20] sm:$0xff]  ;;  %209 = vmatpush3.msk.msra.mxu0 %vm56_vm0, %v23_v0  ;;  %223 = vmatpush3.msk.msra.mxu1 %vm56_vm0, %v23_v0 }
   0x4   :  { %210 = vmatprep.mubr.msk.f32.mxu0 %vm31_vm1, %v15_v1  ;;  %216 = vmatprep.mubr.msk.f32.mxu1 %vm31_vm1, %v19_v2 }
   0x5   :  { %8 = vsyncpa [#allocation3], 0  ;;  %211 = vmatmul.mubr.msk.f32.vlgmr.msra.gmra.mrb[0].mxu0 %vm31_vm1, %v16_v3  ;;  %217 = vmatmul.mubr.msk.f32.vlgmr.msra.gmra.mrb[0].mxu1 %vm31_vm1, %v20_v4  ;;  %v18_v7 = vld [vmem:[%s324_s0 + $0x18] sm:$0xff]  ;;  %v189_v9 = vld [vmem:[%s326_s2] ss:$0 sm:$0xff]  ;;  %s251_s4 = smov [#allocation2]  }
   0x6   :  { %213 = vmatprep.mubr.msk.f32.mxu0 %vm31_vm1, %v17_v5  ;;  %219 = vmatprep.mubr.msk.f32.mxu1 %vm31_vm1, %v21_v6  ;;  %v22_v8 = vld [vmem:[%s324_s0 + $0x38] sm:$0xff]  ;;  %s178_s5 = sshll.u32 %s251_s4, 4  ;;  %s179_s5 = int_to_ptr.vmem [resolvable:$true] %s178_s5 }
   0x7   :  { %s227_s0 = scalar_lea.vmem %s179_s5, 1024  ;;  %p232_p1 = scmp.lt.s32.totalorder %s179_s5, %s179_s5 }
   0x8   :  { %p228_p0 = scmp.ne.s32.totalorder %s179_s5, %s227_s0  ;;  %p233_p2 = scmp.lt.s32.totalorder %s227_s0, %s227_s0 }
   0x9   :  { %214 = vmatmul.mubr.msk.f32.gmra.mrb[2].mxu0 %vm31_vm1, %v18_v7  ;;  %220 = vmatmul.mubr.msk.f32.gmra.mrb[2].mxu1 %vm31_vm1, %v22_v8 }
   0xa   :  { %p234_p3 = por %p233_p2, %p232_p1 }
   0xc   :  { %p235_p4 = pnand %p234_p3, %p228_p0 }
  0xd8   :  { %v212_v10 = vpop.f32.mrb[0].mxu0  ;;  %v218_v11 = vpop.f32.mrb[0].mxu1 }
  0xd9   :  { %v132_v12 = vadd.f32 %v212_v10, %v189_v9  ;;  %v152_v13 = vadd.f32 %v218_v11, %v189_v9  ;;  %v126_v14 = vpop.f32.mrb[1].mxu0  ;;  %v146_v15 = vpop.f32.mrb[1].mxu1 }
  0xda   :  { %v127_v16 = vadd.f32 %v189_v9, %v126_v14  ;;  %v147_v17 = vadd.f32 %v189_v9, %v146_v15 }
  0xdb   :  { %166 = vst [vmem:[#allocation2 + $0x8] sm:$0xff] %v132_v12  ;;  %170 = vst [vmem:[#allocation2 + $0x28] sm:$0xff] %v152_v13 }
  0xdc   :  { %165 = vst [vmem:[#allocation2] sm:$0xff] %v127_v16  ;;  %169 = vst [vmem:[#allocation2 + $0x20] sm:$0xff] %v147_v17  ;;  %v215_v18 = vpop.f32.mrb[2].mxu0  ;;  %v221_v19 = vpop.f32.mrb[2].mxu1 }
  0xdd   :  { %v142_v20 = vadd.f32 %v215_v18, %v189_v9  ;;  %v162_v21 = vadd.f32 %v221_v19, %v189_v9  ;;  %v136_v22 = vpop.f32.mrb[3].mxu0  ;;  %v156_v23 = vpop.f32.mrb[3].mxu1 }
  0xde   :  { %v137_v24 = vadd.f32 %v189_v9, %v136_v22  ;;  %v157_v25 = vadd.f32 %v189_v9, %v156_v23 }
  0xdf   :  { %168 = vst [vmem:[#allocation2 + $0x18] sm:$0xff] %v142_v20  ;;  %172 = vst [vmem:[#allocation2 + $0x38] sm:$0xff] %v162_v21 }
  0xe0   :  { %167 = vst [vmem:[#allocation2 + $0x10] sm:$0xff] %v137_v24  ;;  %171 = vst [vmem:[#allocation2 + $0x30] sm:$0xff] %v157_v25 }
  0xe1   :  { %238 = shalt.err (!%p235_p4)
}
  0xe2   :  { %s239_s7 = scalar_lea.hbm %s327_s3, 1024 }
  0xe3   :  { %p240_p5 = scmp.ne.s32.totalorder %s327_s3, %s239_s7  ;;  %p243_p6 = scmp.lt.u32.totalorder %s239_s7, %s327_s3 }
  0xe5   :  { %p245_p7 = pnand %p243_p6, %p240_p5 }
  0xe7   :  { %248 = shalt.err (!%p245_p7)
}
  0xe8   :  { %s252_s12 = smov 128   ;;  %s253_s13 = smov 8  }
  0xe9   :  { %184 = dma.vmem_to_hbm [thread:$0]  %s179_s5, 1024, %s327_s3, [#allocation3], %s252_s12, %s252_s12, %s253_s13  }
  0xea   :  { %249 = dma.done.wait [#allocation3], 1024  }
  0xeb   :  { %250 = vsyncadd [#allocation3], 4294966272 }
  0xec   :  { %188 = vsyncpa [#allocation3], 1 }

</bundles_post_ra>
